<compile_context>
chip_gen: v6e
topology: v6e:2x2x1
jax: 0.10.0
libtpu: 0.0.40
codegen_flags: <defaults>
</compile_context>

<pallas_src>
import functools

import jax
import jax.numpy as jnp
from jax.experimental import pallas as pl
from jax.experimental.pallas import tpu as pltpu


# ----------------------------- tile-size selection --------------------------

def _pick_spatial_tile(n, c, itemsize, max_tile_bytes=2 * 1024 * 1024):
    """Largest multiple of 128 that divides N and keeps a (C, tile) slab <= budget."""
    max_t = max(128, (max_tile_bytes // (c * itemsize)) // 128 * 128)
    best = None
    t = 128
    while t <= min(n, max_t):
        if n % t == 0:
            best = t
        t += 128
    if best is not None:
        return best
    # N not a multiple of 128: fall back to the full spatial extent (single tile,
    # allowed since the block then equals the full array dim).
    return n


# ----------------- kernel 1: global avg pool + squeeze MLP ------------------

def _pool_mlp_kernel(x_ref, w1_ref, b1_ref, w2_ref, b2_ref, y_ref, acc_ref, *, inv_n):
    # x_ref : (1, C, TN)  spatial tile; channels on sublanes, spatial on lanes
    # w1_ref: (Csq, C)   b1_ref: (Csq, 1)
    # w2_ref: (C, Csq)   b2_ref: (C, 1)
    # y_ref : (1, C, 1)  per-(batch, channel) sigmoid gate
    # acc_ref: VMEM (C, 1) f32 running spatial sum
    t = pl.program_id(1)

    @pl.when(t == 0)
    def _():
        acc_ref[...] = jnp.zeros_like(acc_ref)

    # Partial spatial sum of this tile (lane reduction -> (C, 1) column).
    acc_ref[...] += jnp.sum(x_ref[0].astype(jnp.float32), axis=-1, keepdims=True)

    @pl.when(t == pl.num_programs(1) - 1)
    def _():
        mean = acc_ref[...] * inv_n                                      # (C, 1)
        h = jnp.dot(w1_ref[...], mean,
                    preferred_element_type=jnp.float32) + b1_ref[...]    # (Csq, 1)
        h = jnp.maximum(h, 0.0)                                          # ReLU
        g = jnp.dot(w2_ref[...], h,
                    preferred_element_type=jnp.float32) + b2_ref[...]    # (C, 1)
        y_ref[0] = jax.nn.sigmoid(g).astype(y_ref.dtype)                 # Sigmoid


def _pool_mlp(x, w1, b1, w2, b2, tn):
    B, C, N = x.shape
    Csq = w1.shape[0]
    kernel = functools.partial(_pool_mlp_kernel, inv_n=1.0 / N)
    return pl.pallas_call(
        kernel,
        out_shape=jax.ShapeDtypeStruct((B, C, 1), jnp.float32),
        grid_spec=pltpu.PrefetchScalarGridSpec(
            num_scalar_prefetch=0,
            grid=(B, N // tn),                       # reduction axis last
            in_specs=[
                pl.BlockSpec((1, C, tn), lambda b, t: (b, 0, t)),
                pl.BlockSpec((Csq, C), lambda b, t: (0, 0)),
                pl.BlockSpec((Csq, 1), lambda b, t: (0, 0)),
                pl.BlockSpec((C, Csq), lambda b, t: (0, 0)),
                pl.BlockSpec((C, 1), lambda b, t: (0, 0)),
            ],
            out_specs=pl.BlockSpec((1, C, 1), lambda b, t: (b, 0, 0)),
            scratch_shapes=[pltpu.VMEM((C, 1), jnp.float32)],
        ),
        compiler_params=pltpu.CompilerParams(
            dimension_semantics=("parallel", "arbitrary")),
    )(x, w1, b1, w2, b2)


# ---------------------- kernel 2: per-channel rescale -----------------------

def _scale_kernel(x_ref, y_ref, o_ref):
    # x_ref: (1, C, TN)  y_ref: (1, C, 1)  o_ref: (1, C, TN)
    o_ref[0] = (x_ref[0] * y_ref[0].astype(x_ref.dtype)).astype(o_ref.dtype)


def _scale(x, y, tn):
    B, C, N = x.shape
    return pl.pallas_call(
        _scale_kernel,
        out_shape=jax.ShapeDtypeStruct((B, C, N), x.dtype),
        grid_spec=pltpu.PrefetchScalarGridSpec(
            num_scalar_prefetch=0,
            grid=(B, N // tn),
            in_specs=[
                pl.BlockSpec((1, C, tn), lambda b, t: (b, 0, t)),
                pl.BlockSpec((1, C, 1), lambda b, t: (b, 0, 0)),
            ],
            out_specs=pl.BlockSpec((1, C, tn), lambda b, t: (b, 0, t)),
        ),
        compiler_params=pltpu.CompilerParams(
            dimension_semantics=("parallel", "parallel")),
    )(x, y)


# ------------------------------ full forward --------------------------------

def channel_attention(x_nchw, params):
    """x_nchw: (B, C, H, W) -> (B, C, H, W), matching ChannelAttention.forward."""
    B, C, H, W = x_nchw.shape
    N = H * W
    x = x_nchw.reshape(B, C, N)                      # spatial dim on lanes
    tn = _pick_spatial_tile(N, C, x.dtype.itemsize)
    gate = _pool_mlp(x, params['w1'], params['b1'], params['w2'], params['b2'], tn)
    out = _scale(x, gate, tn)
    return out.reshape(B, C, H, W)


def channel_attention_ref(x, params):
    """Pure-JAX reference for correctness checking."""
    mean = jnp.mean(x, axis=(2, 3))                                    # (B, C)
    h = jnp.maximum(mean @ params['w1'].T + params['b1'][:, 0], 0.0)   # (B, Csq)
    y = jax.nn.sigmoid(h @ params['w2'].T + params['b2'][:, 0])        # (B, C)
    return x * y[:, :, None, None]


# --------------------------------- main --------------------------------------

if __name__ == "__main__":
    B, C, H, W = 2, 64, 16, 16          # num_feat = 64
    squeeze_factor = 16
    Csq = C // squeeze_factor           # = 4

    key = jax.random.PRNGKey(0)
    kx, k1, k2, k3, k4 = jax.random.split(key, 5)
    x = jax.random.normal(kx, (B, C, H, W), jnp.float32)
    params = dict(
        # Conv2d(C, Csq, 1) weight/bias  and  Conv2d(Csq, C, 1) weight/bias,
        # stored as (out, in) matrices / (out, 1) column biases.
        w1=jax.random.normal(k1, (Csq, C), jnp.float32) * 0.1,
        b1=jax.random.normal(k2, (Csq, 1), jnp.float32) * 0.1,
        w2=jax.random.normal(k3, (C, Csq), jnp.float32) * 0.1,
        b2=jax.random.normal(k4, (C, 1), jnp.float32) * 0.1,
    )

    out = channel_attention(x, params)
    out = jax.block_until_ready(out)
    assert out.shape == (B, C, H, W)

    ref = channel_attention_ref(x, params)
    ref = jax.block_until_ready(ref)
    err = float(jnp.max(jnp.abs(out - ref)))
    assert err < 1e-4, f"max abs err {err}"

    print("KERNEL_OK")
</pallas_src>

<mosaic_0001>
module attributes {stable_mosaic.version = 11 : i64} {
  func.func @_pool_mlp_kernel(%arg0: i32, %arg1: i32, %arg2: memref<1x64x256xf32, #tpu.memory_space<vmem>>, %arg3: memref<4x64xf32, #tpu.memory_space<vmem>>, %arg4: memref<4x1xf32, #tpu.memory_space<vmem>>, %arg5: memref<64x4xf32, #tpu.memory_space<vmem>>, %arg6: memref<64x1xf32, #tpu.memory_space<vmem>>, %arg7: memref<1x64x1xf32, #tpu.memory_space<vmem>>, %arg8: memref<64x1xf32, #tpu.memory_space<vmem>>) attributes {dimension_semantics = [#tpu.dimension_semantics<parallel>, #tpu.dimension_semantics<arbitrary>], iteration_bounds = array<i64: 2, 1>, scalar_prefetch = 0 : i64, scratch_operands = 1 : i64, tpu.core_type = #tpu.core_type<tc>, window_params = [{transform_indices = @transform_0, window_bounds = array<i64: 1, 64, 256>}, {pipeline_mode = #tpu.pipeline_mode<synchronous>, transform_indices = @transform_1, window_bounds = array<i64: 4, 64>}, {pipeline_mode = #tpu.pipeline_mode<synchronous>, transform_indices = @transform_2, window_bounds = array<i64: 4, 1>}, {pipeline_mode = #tpu.pipeline_mode<synchronous>, transform_indices = @transform_3, window_bounds = array<i64: 64, 4>}, {pipeline_mode = #tpu.pipeline_mode<synchronous>, transform_indices = @transform_4, window_bounds = array<i64: 64, 1>}, {transform_indices = @transform_5, window_bounds = array<i64: 1, 64, 1>}]} {
    %c0_i32 = arith.constant 0 : i32
    %0 = arith.cmpi eq, %arg1, %c0_i32 : i32
    %1 = arith.extui %0 : i1 to i32
    %c0_i32_0 = arith.constant 0 : i32
    %2 = arith.cmpi ne, %1, %c0_i32_0 : i32
    scf.if %2 {
      %cst_9 = arith.constant 0.000000e+00 : f32
      %13 = vector.broadcast %cst_9 : f32 to vector<64x1xf32>
      %c0_10 = arith.constant 0 : index
      %c0_11 = arith.constant 0 : index
      %14 = vector.load %arg8[%c0_10, %c0_11] : memref<64x1xf32, #tpu.memory_space<vmem>>, vector<64x1xf32>
      tpu.vector_store %arg8[%c0_10, %c0_11], %13 {strides = array<i32>} : memref<64x1xf32, #tpu.memory_space<vmem>>, vector<64x1xf32>,
    } else {
    }
    %c0 = arith.constant 0 : index
    %c0_1 = arith.constant 0 : index
    %3 = vector.load %arg8[%c0, %c0_1] : memref<64x1xf32, #tpu.memory_space<vmem>>, vector<64x1xf32>
    %c0_2 = arith.constant 0 : index
    %c0_3 = arith.constant 0 : index
    %c0_4 = arith.constant 0 : index
    %4 = vector.load %arg2[%c0_2, %c0_3, %c0_4] : memref<1x64x256xf32, #tpu.memory_space<vmem>>, vector<1x64x256xf32>
    %5 = vector.shape_cast %4 : vector<1x64x256xf32> to vector<64x256xf32>
    %cst = arith.constant dense<0.000000e+00> : vector<64xf32>
    %6 = vector.multi_reduction <add>, %5, %cst [1] : vector<64x256xf32> to vector<64xf32>
    %7 = vector.shape_cast %6 : vector<64xf32> to vector<64x1xf32>
    %8 = arith.addf %3, %7 : vector<64x1xf32>
    %c0_5 = arith.constant 0 : index
    %c0_6 = arith.constant 0 : index
    %9 = vector.load %arg8[%c0_5, %c0_6] : memref<64x1xf32, #tpu.memory_space<vmem>>, vector<64x1xf32>
    tpu.vector_store %arg8[%c0_5, %c0_6], %8 {strides = array<i32>} : memref<64x1xf32, #tpu.memory_space<vmem>>, vector<64x1xf32>,
    %c0_i32_7 = arith.constant 0 : i32
    %10 = arith.cmpi eq, %arg1, %c0_i32_7 : i32
    %11 = arith.extui %10 : i1 to i32
    %c0_i32_8 = arith.constant 0 : i32
    %12 = arith.cmpi ne, %11, %c0_i32_8 : i32
    scf.if %12 {
      %c0_9 = arith.constant 0 : index
      %c0_10 = arith.constant 0 : index
      %13 = vector.load %arg8[%c0_9, %c0_10] : memref<64x1xf32, #tpu.memory_space<vmem>>, vector<64x1xf32>
      %cst_11 = arith.constant 3.906250e-03 : f32
      %14 = vector.broadcast %cst_11 : f32 to vector<64x1xf32>
      %15 = arith.mulf %13, %14 : vector<64x1xf32>
      %c0_12 = arith.constant 0 : index
      %c0_13 = arith.constant 0 : index
      %16 = vector.load %arg3[%c0_12, %c0_13] : memref<4x64xf32, #tpu.memory_space<vmem>>, vector<4x64xf32>
      %cst_14 = arith.constant dense<0.000000e+00> : vector<4x1xf32>
      %17 = tpu.matmul %16, %15, %cst_14 {dimension_numbers = #tpu.dot_dimension_numbers<[1], [0], [0], [1], [0, 0, 1, 1], [], []>} : vector<4x64xf32>, vector<64x1xf32>, vector<4x1xf32> -> vector<4x1xf32>
      %c0_15 = arith.constant 0 : index
      %c0_16 = arith.constant 0 : index
      %18 = vector.load %arg4[%c0_15, %c0_16] : memref<4x1xf32, #tpu.memory_space<vmem>>, vector<4x1xf32>
      %19 = arith.addf %17, %18 : vector<4x1xf32>
      %cst_17 = arith.constant 0.000000e+00 : f32
      %20 = vector.broadcast %cst_17 : f32 to vector<4x1xf32>
      %21 = arith.maximumf %19, %20 : vector<4x1xf32>
      %c0_18 = arith.constant 0 : index
      %c0_19 = arith.constant 0 : index
      %22 = vector.load %arg5[%c0_18, %c0_19] : memref<64x4xf32, #tpu.memory_space<vmem>>, vector<64x4xf32>
      %cst_20 = arith.constant dense<0.000000e+00> : vector<64x1xf32>
      %23 = tpu.matmul %22, %21, %cst_20 {dimension_numbers = #tpu.dot_dimension_numbers<[1], [0], [0], [1], [0, 0, 1, 1], [], []>} : vector<64x4xf32>, vector<4x1xf32>, vector<64x1xf32> -> vector<64x1xf32>
      %c0_21 = arith.constant 0 : index
      %c0_22 = arith.constant 0 : index
      %24 = vector.load %arg6[%c0_21, %c0_22] : memref<64x1xf32, #tpu.memory_space<vmem>>, vector<64x1xf32>
      %25 = arith.addf %23, %24 : vector<64x1xf32>
      %26 = arith.negf %25 : vector<64x1xf32>
      %27 = math.exp %26 : vector<64x1xf32>
      %cst_23 = arith.constant 1.000000e+00 : f32
      %28 = vector.broadcast %cst_23 : f32 to vector<64x1xf32>
      %29 = arith.addf %28, %27 : vector<64x1xf32>
      %30 = arith.divf %28, %29 : vector<64x1xf32>
      %c0_24 = arith.constant 0 : index
      %c0_25 = arith.constant 0 : index
      %c0_26 = arith.constant 0 : index
      %31 = vector.load %arg7[%c0_24, %c0_25, %c0_26] : memref<1x64x1xf32, #tpu.memory_space<vmem>>, vector<1x64x1xf32>
      %32 = vector.shape_cast %31 : vector<1x64x1xf32> to vector<64x1xf32>
      %33 = vector.shape_cast %30 : vector<64x1xf32> to vector<1x64x1xf32>
      tpu.vector_store %arg7[%c0_24, %c0_25, %c0_26], %33 {strides = array<i32>} : memref<1x64x1xf32, #tpu.memory_space<vmem>>, vector<1x64x1xf32>,
    } else {
    }
    return
  }
  func.func @transform_0(%arg0: i32, %arg1: i32) -> (i32, i32, i32) {
    %c0_i32 = arith.constant 0 : i32
    %c0_i32_0 = arith.constant 0 : i32
    return %arg0, %c0_i32, %arg1 : i32, i32, i32
  }
  func.func @transform_1(%arg0: i32, %arg1: i32) -> (i32, i32) {
    %c0_i32 = arith.constant 0 : i32
    %c0_i32_0 = arith.constant 0 : i32
    %c0_i32_1 = arith.constant 0 : i32
    return %c0_i32, %c0_i32_0 : i32, i32
  }
  func.func @transform_2(%arg0: i32, %arg1: i32) -> (i32, i32) {
    %c0_i32 = arith.constant 0 : i32
    %c0_i32_0 = arith.constant 0 : i32
    %c0_i32_1 = arith.constant 0 : i32
    return %c0_i32, %c0_i32_0 : i32, i32
  }
  func.func @transform_3(%arg0: i32, %arg1: i32) -> (i32, i32) {
    %c0_i32 = arith.constant 0 : i32
    %c0_i32_0 = arith.constant 0 : i32
    %c0_i32_1 = arith.constant 0 : i32
    return %c0_i32, %c0_i32_0 : i32, i32
  }
  func.func @transform_4(%arg0: i32, %arg1: i32) -> (i32, i32) {
    %c0_i32 = arith.constant 0 : i32
    %c0_i32_0 = arith.constant 0 : i32
    %c0_i32_1 = arith.constant 0 : i32
    return %c0_i32, %c0_i32_0 : i32, i32
  }
  func.func @transform_5(%arg0: i32, %arg1: i32) -> (i32, i32, i32) {
    %c0_i32 = arith.constant 0 : i32
    %c0_i32_0 = arith.constant 0 : i32
    %c0_i32_1 = arith.constant 0 : i32
    return %arg0, %c0_i32, %c0_i32_0 : i32, i32, i32
  }
}

</mosaic_0001>

<bundles_post_ra>
// kernel: tpu_custom_call.1
= control target key start
LH: loop header
LB: loop body
LE: loop exit
PB: predicated region body
PF: predicated region fallthrough
CT: control target
= control target key end

     0   :  { %10 = vsyncpa [#allocation4], 0  ;;  %s1227_s0 = inlined_call_operand.hbm [shape: f32[2,64,256], index: 0, kind: input, shape index: {}]   ;;  %s1228_s1 = inlined_call_operand.vmem [shape: f32[4,64], index: 1, kind: input, shape index: {}]   ;;  %s1229_s2 = inlined_call_operand.vmem [shape: f32[4,1], index: 2, kind: input, shape index: {}]   ;;  %s1230_s3 = inlined_call_operand.vmem [shape: f32[64,4], index: 3, kind: input, shape index: {}]   ;;  %s1231_s4 = inlined_call_operand.vmem [shape: f32[64,1], index: 4, kind: input, shape index: {}]   ;;  %s1232_s5 = inlined_call_operand.vmem [shape: f32[2,64,1], index: 5, kind: output, shape index: {}]  }
   0x1   :  { %12 = vsyncpa [#allocation4 + $0x1], 0  ;;  %s1010_s18 = smov 0   ;;  %s1012_s19 = smov 0  }
   0x2   :  { %s1014_s20 = smov 0   ;;  %s1016_s21 = smov 0  }
   0x3   :  { %s1018_s22 = smov 0   ;;  %s1020_s23 = smov 0  }
   0x4 LB: > { %s720_s24 = sadd.s32 4294967295, %s973_s23   ;;  %s30_s25 = sadd.s32 1, %s969_s22  ;;  %s973_s23 = sphi %s1020_s23, %s18_s23   ;;  %s969_s22 = sphi %s1018_s22, %s1240_s22   ;;  %s965_s21 = sphi %s1016_s21, %s1239_s21   ;;  %s961_s20 = sphi %s1014_s20, %s1238_s20   ;;  %s957_s19 = sphi %s1012_s19, %s1237_s19   ;;  %s953_s18 = sphi %s1010_s18, %s1236_s18  }
   0x5   : > { %p32_p0 = scmp.ge.s32.totalorder %s30_s25, 2  ;;  %s39_s26 = sadd.s32 1, %s961_s20 }
   0x6   : > { %p46_p1 = scmp.ne.s32.totalorder %s961_s20, %s957_s19  ;;  %p47_p2 = scmp.eq.s32.totalorder %s973_s23, 0 }
   0x7   : > { %s1242_s25 = smov (%p32_p0, %s30_s25), 0  ;;  %p52_p4 = scmp.ne.s32.totalorder %s957_s19, %s953_s18 }
   0x8   : > { %p1046_p3 = por %p47_p2, %p46_p1  ;;  %s34_s28 = ssub.s32 %s969_s22, %s1242_s25 }
   0x9   : > { %p53_p5 = scmp.eq.s32.totalorder %s720_s24, 0  ;;  %p37_p6 = scmp.eq.s32.totalorder %s34_s28, 0 }
   0xa   : > { %p810_p8 = scmp.lt.s32.totalorder %s973_s23, 2  ;;  %s198_s6 = sand.u32 1, %s961_s20  }
   0xb   : > { %p1053_p7 = por %p53_p5, %p52_p4  ;;  %s751_s7 = sshll.u32 %s969_s22, 11 }
   0xc   : > { %s1059_s30 = scalar_select %p37_p6, %s961_s20, %s39_s26  }
   0xd   : > { %s724_s8 = sshll.u32 %s198_s6, 7  ;;  %s210_s11 = scalar_lea.hbm %s1227_s0, %s751_s7 }
   0xe   : > { %s202_s12 = scalar_lea.vmem [#allocation3], %s724_s8  ;;  %p1068_p9 = pnand %p810_p8, %p1046_p3 }
   0xf   : > { %s211_s13 = sshll.u32 %s202_s12, 4  ;;  %s199_s15 = scalar_lea.sflag [#allocation4], %s198_s6  ;;  %s212_s13 = int_to_ptr.vmem [resolvable:$true] %s211_s13 }
  0x10   : > { %p897_p10 = pneg %p1068_p9  ;;  %s908_s16 = scalar_lea.vmem %s212_s13, 2048 }
  0x11   : > { %p909_p11 = scmp.ne.s32.totalorder %s212_s13, %s908_s16  ;;  %s975_s17 = smov [#allocation3]  }
  0x12   : > { %s913_s18 = sshll.u32 %s975_s17, 4  ;;  %s914_s18 = int_to_ptr.vmem [resolvable:$false] %s913_s18 }
  0x13   : > { %p911_p12 = pnand %p909_p11, %p897_p10  ;;  %s915_s24 = scalar_lea.vmem %s914_s18, 4096 }
  0x14   : > { %p916_p0 = scmp.lt.s32.totalorder %s212_s13, %s914_s18  ;;  %p917_p1 = scmp.lt.s32.totalorder %s915_s24, %s908_s16 }
  0x15   : > { %p912_p13 = pneg %p911_p12 }
  0x16   : > { %p918_p2 = por %p917_p1, %p916_p0 }
  0x18   : > { %p919_p3 = pnand %p918_p2, %p912_p13 }
  0x1a   : > { %922 = shalt.err (!%p919_p3)
}
  0x1b   : > { %s976_s26 = smov 256   ;;  %s977_s27 = smov 16  }
  0x1c   : > { %809 = dma.hbm_to_vmem [thread:$0]  (!%p1068_p9), %s210_s11, 2048, %s212_s13, %s199_s15, %s976_s26, %s976_s26, %s977_s27  }
  0x1d   : > { %p727_p4 = scmp.ge.s32.totalorder %s973_s23, 1  ;;  %p219_p5 = scmp.lt.s32.totalorder %s973_s23, 3 }
  0x1f   : > { %p220_p6 = pnand %p727_p4, %p219_p5 }
  0x20   : > { %s225_s28 = sand.u32 (!%p220_p6), 1, %s957_s19  }
  0x21   : > { %223 = sbr.rel (%p220_p6) target bundleno = 650 (0x28a), region = 40  ;;  %s728_s6 = sshll.u32 (!%p220_p6), %s225_s28, 7 }
  0x22   : > { %s226_s7 = scalar_lea.sflag (!%p220_p6), [#allocation4], %s225_s28  ;;  %s1079_s8 = scalar_lea.vmem (!%p220_p6), [#allocation3], %s728_s6 }
  0x26   : > { %948 = dma.done.wait (%p1053_p7), %s226_s7, 2048  }
  0x27   : > { %950 = vsyncadd (%p1053_p7), %s226_s7, 4294965248  ;;  %vm266_vm0 = vcmask 7168   ;;  %v978_v0 = vmov 0.0   ;;  %v297_v1 = vld [vmem:[%s1079_s8 + $0x70] sm:$0xff]  ;;  %v298_v2 = vld [vmem:[%s1079_s8 + $0x78] sm:$0xff]  ;;  %vm979_vm1 = vmmov 0  }
  0x28   : > { %274 = vst.msk [vmem:[#allocation2 + $0x38] sm:$0xff] %vm266_vm0, %v978_v0  ;;  %267 = vst.msk [vmem:[#allocation2] sm:$0xff] %vm266_vm0, %v978_v0  ;;  %771 = vmatprep.subr.mxu0 %v978_v0  ;;  %v295_v3 = vld [vmem:[%s1079_s8 + $0x60] sm:$0xff]  ;;  %v320_v4 = vadd.f32 %v298_v2, %v297_v1  ;;  %v296_v5 = vld [vmem:[%s1079_s8 + $0x68] sm:$0xff]  ;;  %787 = vmatprep.mubr.msk.f32.mxu0 %vm979_vm1, %v978_v0  ;;  %vm361_vm2 = vcmask 523264   ;;  %vm452_vm3 = vcmask 31744  }
  0x29   : > { %268 = vst.msk [vmem:[#allocation2 + $0x8] sm:$0xff] %vm266_vm0, %v978_v0  ;;  %269 = vst.msk [vmem:[#allocation2 + $0x10] sm:$0xff] %vm266_vm0, %v978_v0  ;;  %v293_v6 = vld [vmem:[%s1079_s8 + $0x50] sm:$0xff]  ;;  %v294_v7 = vld [vmem:[%s1079_s8 + $0x58] sm:$0xff]  ;;  %v317_v11 = vadd.f32 %v296_v5, %v295_v3  ;;  %vm477_vm4 = vcmask 1043456   ;;  %p257_p7 = scmp.lt.s32.totalorder %s965_s21, 1 }
  0x2a   : > { %270 = vst.msk [vmem:[#allocation2 + $0x18] sm:$0xff] %vm266_vm0, %v978_v0  ;;  %271 = vst.msk [vmem:[#allocation2 + $0x20] sm:$0xff] %vm266_vm0, %v978_v0  ;;  %v314_v8 = vadd.f32 %v294_v7, %v293_v6  ;;  %v291_v9 = vld [vmem:[%s1079_s8 + $0x40] sm:$0xff]  ;;  %v292_v10 = vld [vmem:[%s1079_s8 + $0x48] sm:$0xff]  ;;  %321 = vadd.xlane.f32.xlu0 %v320_v4 }
  0x2b   : > { %272 = vst.msk [vmem:[#allocation2 + $0x28] sm:$0xff] %vm266_vm0, %v978_v0  ;;  %273 = vst.msk [vmem:[#allocation2 + $0x30] sm:$0xff] %vm266_vm0, %v978_v0  ;;  %v311_v12 = vadd.f32 %v292_v10, %v291_v9  ;;  %v289_v13 = vld [vmem:[%s1079_s8 + $0x30] sm:$0xff]  ;;  %v290_v14 = vld [vmem:[%s1079_s8 + $0x38] sm:$0xff]  ;;  %s1244_s21 = smov (!%p257_p7, %s965_s21), 1 }
  0x2c   : > { %315 = vadd.xlane.f32.xlu1 %v314_v8  ;;  %v287_v15 = vld [vmem:[%s1079_s8 + $0x20] sm:$0xff]  ;;  %v288_v16 = vld [vmem:[%s1079_s8 + $0x28] sm:$0xff]  ;;  %v308_v17 = vadd.f32 %v290_v14, %v289_v13  ;;  %v285_v19 = vld [vmem:[%s1079_s8 + $0x10] sm:$0xff]  ;;  %s752_s29 = sshll.u32 %s1244_s21, 6 }
  0x2d   : > { %v305_v18 = vadd.f32 %v288_v16, %v287_v15  ;;  %v286_v20 = vld [vmem:[%s1079_s8 + $0x18] sm:$0xff]  ;;  %v283_v21 = vld [vmem:[%s1079_s8] sm:$0xff]  ;;  %v284_v22 = vld [vmem:[%s1079_s8 + $0x8] sm:$0xff]  ;;  %s261_s11 = scalar_lea.vmem %s1232_s5, %s752_s29 }
  0x2e   : > { %318 = vadd.xlane.f32.xlu0 %v317_v11  ;;  %v302_v23 = vadd.f32 %v286_v20, %v285_v19  ;;  %v299_v24 = vadd.f32 %v284_v22, %v283_v21  ;;  %v359_v2 = vld [vmem:[%s1228_s1] sm:$0xf]  ;;  %v438_v9 = vld [vmem:[%s1230_s3 + $0x10] sm:$0xff]  ;;  %v439_v10 = vld [vmem:[%s1230_s3 + $0x18] sm:$0xff] }
  0x2f   : > { %v282_v25 = vld [vmem:[#allocation2 + $0x38] sm:$0xff]  ;;  %v275_v46 = vld [vmem:[#allocation2] sm:$0xff]  ;;  %v442_v13 = vld [vmem:[%s1230_s3 + $0x30] sm:$0xff] }
  0x30   : > { %312 = vadd.xlane.f32.xlu1 %v311_v12  ;;  %v277_v38 = vld [vmem:[#allocation2 + $0x10] sm:$0xff]  ;;  %v276_v44 = vld [vmem:[#allocation2 + $0x8] sm:$0xff]  ;;  %v436_v3 = vld [vmem:[%s1230_s3] sm:$0xff] }
  0x31   : > { %v279_v32 = vld [vmem:[#allocation2 + $0x20] sm:$0xff]  ;;  %v278_v37 = vld [vmem:[#allocation2 + $0x18] sm:$0xff]  ;;  %792 = vmatprep.mubr.msk.f32.mxu1 %vm452_vm3, %v436_v3  ;;  %v441_v12 = vld [vmem:[%s1230_s3 + $0x28] sm:$0xff] }
  0x32   : > { %309 = vadd.xlane.f32.xlu0 %v308_v17  ;;  %v280_v26 = vld [vmem:[#allocation2 + $0x28] sm:$0xff]  ;;  %v281_v30 = vld [vmem:[#allocation2 + $0x30] sm:$0xff]  ;;  %v360_v4 = vld [vmem:[%s1229_s2] sm:$0xf] }
  0x33   : > { %v440_v11 = vld [vmem:[%s1230_s3 + $0x20] sm:$0xff]  ;;  %v443_v14 = vld [vmem:[%s1230_s3 + $0x38] sm:$0xff]  ;;  %v445_v15 = vld [vmem:[%s1231_s4 + $0x8] sm:$0xff] }
  0x34   : > { %306 = vadd.xlane.f32.xlu1 %v305_v18  ;;  %v444_v17 = vld [vmem:[%s1231_s4] sm:$0xff]  ;;  %v447_v20 = vld [vmem:[%s1231_s4 + $0x18] sm:$0xff] }
  0x36   : > { %303 = vadd.xlane.f32.xlu0 %v302_v23 }
  0x38   : > { %300 = vadd.xlane.f32.xlu1 %v299_v24  ;;  %v446_v24 = vld [vmem:[%s1231_s4 + $0x10] sm:$0xff] }
  0xb3   : > { %v322_v27 = vpop.xlane.xlu0 %321 }
  0xb4   : > { %v330_v28 = vadd.f32 %v322_v27, %v282_v25 }
  0xb5   : > { %v316_v29 = vpop.xlane.xlu1 %315 }
  0xb6   : > { %v328_v31 = vadd.f32 %v316_v29, %v280_v26  ;;  %339 = vst.msk [vmem:[#allocation2 + $0x38] sm:$0xff] %vm266_vm0, %v330_v28  ;;  %v449_v28 = vld [vmem:[%s1231_s4 + $0x28] sm:$0xff] }
  0xb7   : > { %v319_v33 = vpop.xlane.xlu0 %318 }
  0xb8   : > { %337 = vst.msk [vmem:[#allocation2 + $0x28] sm:$0xff] %vm266_vm0, %v328_v31  ;;  %v329_v34 = vadd.f32 %v319_v33, %v281_v30 }
  0xb9   : > { %v313_v35 = vpop.xlane.xlu1 %312 }
  0xba   : > { %v327_v36 = vadd.f32 %v313_v35, %v279_v32  ;;  %338 = vst.msk [vmem:[#allocation2 + $0x30] sm:$0xff] %vm266_vm0, %v329_v34  ;;  %v448_v32 = vld [vmem:[%s1231_s4 + $0x20] sm:$0xff] }
  0xbb   : > { %v310_v39 = vpop.xlane.xlu0 %309 }
  0xbc   : > { %336 = vst.msk [vmem:[#allocation2 + $0x20] sm:$0xff] %vm266_vm0, %v327_v36  ;;  %v326_v40 = vadd.f32 %v310_v39, %v278_v37  ;;  %v451_v36 = vld [vmem:[%s1231_s4 + $0x38] sm:$0xff] }
  0xbd   : > { %v307_v41 = vpop.xlane.xlu1 %306  ;;  %v350_v43 = vld [vmem:[#allocation2 + $0x38] sm:$0xff] }
  0xbe   : > { %v325_v42 = vadd.f32 %v307_v41, %v277_v38  ;;  %335 = vst.msk [vmem:[#allocation2 + $0x18] sm:$0xff] %vm266_vm0, %v326_v40  ;;  %v358_v45 = vmul.f32 0.00390625, %v350_v43  ;;  %v450_v40 = vld [vmem:[%s1231_s4 + $0x30] sm:$0xff] }
  0xbf   : > { %v304_v47 = vpop.xlane.xlu0 %303  ;;  %v348_v52 = vld [vmem:[#allocation2 + $0x28] sm:$0xff] }
  0xc0   : > { %334 = vst.msk [vmem:[#allocation2 + $0x10] sm:$0xff] %vm266_vm0, %v325_v42  ;;  %772 = vmatpush3.msra.mxu0 %v358_v45  ;;  %v324_v48 = vadd.f32 %v304_v47, %v276_v44  ;;  %v356_v55 = vmul.f32 0.00390625, %v348_v52 }
  0xc1   : > { %v301_v49 = vpop.xlane.xlu1 %300  ;;  %773 = vmatprep.subr.mxu0 %v978_v0  ;;  %v349_v51 = vld [vmem:[#allocation2 + $0x30] sm:$0xff] }
  0xc2   : > { %v323_v50 = vadd.f32 %v301_v49, %v275_v46  ;;  %333 = vst.msk [vmem:[#allocation2 + $0x8] sm:$0xff] %vm266_vm0, %v324_v48  ;;  %v357_v53 = vmul.f32 0.00390625, %v349_v51 }
  0xc3   : > { %v347_v54 = vld [vmem:[#allocation2 + $0x20] sm:$0xff] }
  0xc4   : > { %332 = vst.msk [vmem:[#allocation2] sm:$0xff] %vm266_vm0, %v323_v50  ;;  %774 = vmatpush3.msra.mxu0 %v357_v53  ;;  %v355_v56 = vmul.f32 0.00390625, %v347_v54 }
  0xc5   : > { %775 = vmatprep.subr.mxu0 %v978_v0  ;;  %v346_v57 = vld [vmem:[#allocation2 + $0x18] sm:$0xff] }
  0xc6   : > { %776 = vmatpush3.msra.mxu0 %v356_v55  ;;  %v354_v58 = vmul.f32 0.00390625, %v346_v57 }
  0xc7   : > { %v345_v59 = vld [vmem:[#allocation2 + $0x10] sm:$0xff]  ;;  %777 = vmatprep.subr.mxu0 %v978_v0 }
  0xc8   : > { %778 = vmatpush3.msra.mxu0 %v355_v56  ;;  %v353_v60 = vmul.f32 0.00390625, %v345_v59 }
  0xc9   : > { %779 = vmatprep.subr.mxu0 %v978_v0  ;;  %v344_v61 = vld [vmem:[#allocation2 + $0x8] sm:$0xff] }
  0xca   : > { %780 = vmatpush3.msra.mxu0 %v354_v58  ;;  %v352_v62 = vmul.f32 0.00390625, %v344_v61 }
  0xcb   : > { %v343_v63 = vld [vmem:[#allocation2] sm:$0xff]  ;;  %781 = vmatprep.subr.mxu0 %v978_v0 }
  0xcc   : > { %782 = vmatpush3.msra.mxu0 %v353_v60  ;;  %v351_v1 = vmul.f32 0.00390625, %v343_v63 }
  0xcd   : > { %783 = vmatprep.subr.mxu0 %v978_v0 }
  0xce   : > { %784 = vmatpush3.msra.mxu0 %v352_v62 }
  0xcf   : > { %785 = vmatprep.subr.mxu0 %v978_v0  ;;  %v437_v0 = vld [vmem:[%s1230_s3 + $0x8] sm:$0xff] }
  0xd0   : > { %786 = vmatpush3.msra.mxu0 %v351_v1 }
  0xd1   : > { %788 = vmatmul.mubr.msk.f32.vlgmr.msra.gmra.mxu0 %vm361_vm2, %v359_v2 }
 0x191   : > { %v431_v5 = vpop.f32.mrf.mxu0 }
 0x192   : > { %v432_v6 = vadd.f32 %v431_v5, %v360_v4 }
 0x193   : > { %v789_v7 = vpop.f32.mrf.mxu0 }
 0x194   : > { %v435_v8 = vmax.f32 %v432_v6, 0.0 }
 0x196   : > { %790 = vmatprep.subr.msk.mxu1 %vm477_vm4, %v435_v8 }
 0x197   : > { %791 = vmatpush3.msk.msra.mxu1 %vm477_vm4, %v435_v8 }
 0x198   : > { %793 = vmatmul.mubr.msk.f32.vlgmr.msra.gmra.mxu1 %vm452_vm3, %v437_v0 }
 0x199   : > { %795 = vmatprep.mubr.msk.f32.mxu1 %vm452_vm3, %v438_v9 }
 0x19c   : > { %796 = vmatmul.mubr.msk.f32.gmra.mxu1 %vm452_vm3, %v439_v10 }
 0x19d   : > { %798 = vmatprep.mubr.msk.f32.mxu1 %vm452_vm3, %v440_v11 }
 0x1a0   : > { %799 = vmatmul.mubr.msk.f32.gmra.mxu1 %vm452_vm3, %v441_v12 }
 0x1a1   : > { %801 = vmatprep.mubr.msk.f32.mxu1 %vm452_vm3, %v442_v13 }
 0x1a4   : > { %802 = vmatmul.mubr.msk.f32.gmra.mxu1 %vm452_vm3, %v443_v14 }
 0x258   : > { %v794_v16 = vpop.f32.mrf.mxu1 }
 0x259   : > { %v553_v18 = vadd.f32 %v794_v16, %v445_v15 }
 0x25a   : > { %v547_v19 = vpop.f32.mrf.mxu1 }
 0x25b   : > { %v742_v21 = vmul.f32 -1.442695, %v553_v18  ;;  %v548_v22 = vadd.f32 %v547_v19, %v444_v17 }
 0x25c   : > { %v797_v23 = vpop.f32.mrf.mxu1 }
 0x25d   : > { %863 = vpow2.f32 %v742_v21  ;;  %v741_v25 = vmul.f32 -1.442695, %v548_v22  ;;  %v563_v26 = vadd.f32 %v797_v23, %v447_v20 }
 0x25e   : > { %v557_v27 = vpop.f32.mrf.mxu1 }
 0x25f   : > { %865 = vpow2.f32 %v741_v25  ;;  %v744_v29 = vmul.f32 -1.442695, %v563_v26  ;;  %v558_v30 = vadd.f32 %v557_v27, %v446_v24 }
 0x260   : > { %v800_v31 = vpop.f32.mrf.mxu1 }
 0x261   : > { %867 = vpow2.f32 %v744_v29  ;;  %v743_v33 = vmul.f32 -1.442695, %v558_v30  ;;  %v573_v34 = vadd.f32 %v800_v31, %v449_v28 }
 0x262   : > { %v567_v35 = vpop.f32.mrf.mxu1 }
 0x263   : > { %869 = vpow2.f32 %v743_v33  ;;  %v746_v37 = vmul.f32 -1.442695, %v573_v34  ;;  %v568_v38 = vadd.f32 %v567_v35, %v448_v32 }
 0x264   : > { %v803_v39 = vpop.f32.mrf.mxu1 }
 0x265   : > { %871 = vpow2.f32 %v746_v37  ;;  %v745_v41 = vmul.f32 -1.442695, %v568_v38  ;;  %v583_v42 = vadd.f32 %v803_v39, %v451_v36 }
 0x266   : > { %v577_v43 = vpop.f32.mrf.mxu1 }
 0x267   : > { %873 = vpow2.f32 %v745_v41  ;;  %v748_v44 = vmul.f32 -1.442695, %v583_v42  ;;  %v578_v45 = vadd.f32 %v577_v43, %v450_v40 }
 0x269   : > { %875 = vpow2.f32 %v748_v44  ;;  %v747_v46 = vmul.f32 -1.442695, %v578_v45 }
 0x26a   : > { %v864_v47 = vpop.eup %863 }
 0x26b   : > { %v611_v48 = vadd.f32 1.0, %v864_v47  ;;  %877 = vpow2.f32 %v747_v46 }
 0x26c   : > { %v866_v49 = vpop.eup %865 }
 0x26d   : > { %879 = vrcp.f32 %v611_v48  ;;  %v610_v50 = vadd.f32 1.0, %v866_v49 }
 0x26e   : > { %v868_v51 = vpop.eup %867 }
 0x26f   : > { %881 = vrcp.f32 %v610_v50  ;;  %v613_v52 = vadd.f32 1.0, %v868_v51 }
 0x270   : > { %v870_v53 = vpop.eup %869 }
 0x271   : > { %883 = vrcp.f32 %v613_v52  ;;  %v612_v54 = vadd.f32 1.0, %v870_v53 }
 0x272   : > { %v872_v55 = vpop.eup %871 }
 0x273   : > { %885 = vrcp.f32 %v612_v54  ;;  %v615_v56 = vadd.f32 1.0, %v872_v55 }
 0x274   : > { %v874_v57 = vpop.eup %873 }
 0x275   : > { %887 = vrcp.f32 %v615_v56  ;;  %v614_v58 = vadd.f32 1.0, %v874_v57 }
 0x276   : > { %v876_v59 = vpop.eup %875 }
 0x277   : > { %889 = vrcp.f32 %v614_v58  ;;  %v617_v60 = vadd.f32 1.0, %v876_v59 }
 0x278   : > { %v878_v61 = vpop.eup %877 }
 0x279   : > { %891 = vrcp.f32 %v617_v60  ;;  %v616_v62 = vadd.f32 1.0, %v878_v61 }
 0x27a   : > { %v880_v63 = vpop.eup %879 }
 0x27b   : > { %635 = vst.msk [vmem:[%s261_s11 + $0x8] sm:$0xff] %vm266_vm0, %v880_v63  ;;  %893 = vrcp.f32 %v616_v62 }
 0x27c   : > { %v882_v1 = vpop.eup %881 }
 0x27d   : > { %634 = vst.msk [vmem:[%s261_s11] sm:$0xff] %vm266_vm0, %v882_v1 }
 0x27e   : > { %v884_v2 = vpop.eup %883 }
 0x27f   : > { %637 = vst.msk [vmem:[%s261_s11 + $0x18] sm:$0xff] %vm266_vm0, %v884_v2 }
 0x280   : > { %v886_v3 = vpop.eup %885 }
 0x281   : > { %636 = vst.msk [vmem:[%s261_s11 + $0x10] sm:$0xff] %vm266_vm0, %v886_v3 }
 0x282   : > { %v888_v4 = vpop.eup %887 }
 0x283   : > { %639 = vst.msk [vmem:[%s261_s11 + $0x28] sm:$0xff] %vm266_vm0, %v888_v4 }
 0x284   : > { %v890_v5 = vpop.eup %889 }
 0x285   : > { %638 = vst.msk [vmem:[%s261_s11 + $0x20] sm:$0xff] %vm266_vm0, %v890_v5 }
 0x286   : > { %v892_v6 = vpop.eup %891 }
 0x287   : > { %641 = vst.msk [vmem:[%s261_s11 + $0x38] sm:$0xff] %vm266_vm0, %v892_v6 }
 0x288   : > { %v894_v7 = vpop.eup %893 }
 0x289   : > { %640 = vst.msk [vmem:[%s261_s11 + $0x30] sm:$0xff] %vm266_vm0, %v894_v7 }
 0x28a PF: > { %s18_s23 = sadd.s32 1, %s973_s23   ;;  %s1236_s18 = smov %s957_s19 }
 0x28b   : > { %p15_p8 = scmp.ge.s32.totalorder %s18_s23, 4   ;;  %s1237_s19 = smov %s961_s20 }
 0x28c   : > { %s1238_s20 = smov %s1059_s30  ;;  %s1239_s21 = smov %s969_s22 }
 0x28d   : > { %s1240_s22 = smov %s1242_s25  ;;  %17 = sbr.rel (!%p15_p8) target bundleno = 4 (0x4), region = 88 }
 0x292   :  { %663 = vsyncpa [#allocation4], 1 }
 0x293   :  { %665 = vsyncpa [#allocation4 + $0x1], 1 }

</bundles_post_ra>
